<compile_context>
chip_gen: v6e
topology: v6e:2x2x1
jax: 0.10.0
libtpu: 0.0.40
codegen_flags: <defaults>
</compile_context>

<pallas_src>
import functools
import math

import jax
import jax.numpy as jnp
from jax import lax
from jax.experimental import pallas as pl
from jax.experimental.pallas import tpu as pltpu


def _round_up(x, m):
    return (x + m - 1) // m * m


def _actor_kernel(state_ref, params_ref, out_ref, *,
                  state_dim, hidden_dim, action_dim, M, N, K,
                  power_t, max_action, eps):
    H, AD = hidden_dim, action_dim
    M2 = M * M
    SDp = _round_up(state_dim, 16)   # w1 block rows (bf16 sublane-pack aligned)
    VOFF = SDp + H                   # vector-block sublane offset

    # ---- static slices of the single packed bf16 parameter slab ----
    w1 = params_ref[0:state_dim, 0:H]           # (SD, H)  bf16
    w2 = params_ref[SDp:SDp + H, 0:H]           # (H, H)   bf16
    w3 = params_ref[SDp:SDp + H, H:H + AD]      # (H, AD)  bf16

    # rows: 0=b1 1=g1 2=be1 3=b2 4=g2 5=be2 6=b3  (cast once back to f32)
    vec = params_ref[VOFF:VOFF + 8, 0:max(H, AD)].astype(jnp.float32)
    b1, g1, be1 = vec[0:1, :H], vec[1:2, :H], vec[2:3, :H]
    b2, g2, be2 = vec[3:4, :H], vec[4:5, :H], vec[5:6, :H]
    b3 = vec[6:7, :AD]

    x = state_ref[...].astype(jnp.bfloat16)     # state.float(); bf16 MXU input

    def bn(h, g, be):
        # Training-mode BatchNorm1d: biased batch variance, fused affine.
        mu = jnp.mean(h, axis=0, keepdims=True)
        var = jnp.mean(h * h, axis=0, keepdims=True) - mu * mu
        scale = g * lax.rsqrt(var + eps)
        shift = be - mu * scale
        return h * scale + shift

    # ---- l1 + tanh + bn1 ----
    h = jnp.tanh(jnp.dot(x, w1, preferred_element_type=jnp.float32) + b1)
    h = bn(h, g1, be1)

    # ---- l2 + tanh + bn2 ----
    h = jnp.tanh(jnp.dot(h.astype(jnp.bfloat16), w2,
                         preferred_element_type=jnp.float32) + b2)
    h = bn(h, g2, be2)

    # ---- l3 + tanh ----
    a = jnp.tanh(jnp.dot(h.astype(jnp.bfloat16), w3,
                         preferred_element_type=jnp.float32) + b3)

    B = a.shape[0]

    # compute_power: sqrt(Re trace(G G^H)) / sqrt(power_t) == sqrt(sum of the
    # first 2*M^2 squared entries) / sqrt(power_t).  Build its reciprocal on
    # the EUP with max_action folded in.
    g_blk = a[:, :2 * M2]
    inv_power = lax.rsqrt(jnp.sum(g_blk * g_blk, axis=1, keepdims=True)) \
                * (max_action * math.sqrt(power_t))

    # compute_phase: sums of |.| over the LAST 2N columns (reference
    # semantics), times sqrt(2); reciprocals on the EUP.
    abs_a = jnp.abs(a)
    real_sum = jnp.sum(abs_a[:, AD - 2 * N:AD - N], axis=1, keepdims=True)
    imag_sum = jnp.sum(abs_a[:, AD - N:], axis=1, keepdims=True)
    inv_real = pl.reciprocal(real_sum, approx=True) * (max_action / math.sqrt(2.0))
    inv_imag = pl.reciprocal(imag_sum, approx=True) * (max_action / math.sqrt(2.0))

    # reciprocal of division_term (max_action folded in):
    # cat([power (2M^2 cols), real (N), imag (N), ones (2K)])
    col = lax.broadcasted_iota(jnp.int32, (B, AD), 1)
    inv_div = jnp.where(col < 2 * M2, inv_power,
              jnp.where(col < 2 * M2 + N, inv_real,
              jnp.where(col < 2 * M2 + 2 * N, inv_imag,
                        jnp.float32(max_action))))

    # TODO(synk): action_dim < 128 lanes -> masked vst; a lane-dense (B, 128)
    # output sliced outside is possible but the win is sub-microsecond here.
    out_ref[...] = (a * inv_div).astype(out_ref.dtype)


def init_actor_params(key, state_dim, hidden_dim, action_dim):
    """Deterministic PyTorch-style U(-1/sqrt(fan_in), 1/sqrt(fan_in)) init."""
    ks = jax.random.split(key, 6)

    def lin(kw, kb, fan_in, fan_out):
        bound = 1.0 / math.sqrt(fan_in)
        w = jax.random.uniform(kw, (fan_in, fan_out), jnp.float32, -bound, bound)
        b = jax.random.uniform(kb, (fan_out,), jnp.float32, -bound, bound)
        return w, b

    w1, b1 = lin(ks[0], ks[1], state_dim, hidden_dim)
    w2, b2 = lin(ks[2], ks[3], hidden_dim, hidden_dim)
    w3, b3 = lin(ks[4], ks[5], hidden_dim, action_dim)
    return dict(
        w1=w1, b1=b1,
        g1=jnp.ones((hidden_dim,), jnp.float32),
        be1=jnp.zeros((hidden_dim,), jnp.float32),
        w2=w2, b2=b2,
        g2=jnp.ones((hidden_dim,), jnp.float32),
        be2=jnp.zeros((hidden_dim,), jnp.float32),
        w3=w3, b3=b3,
    )


def pack_actor_params(params, state_dim, hidden_dim, action_dim):
    """One-time packing: 10 parameter arrays -> ONE lane-dense bf16 slab.

    Layout (sublane offsets are multiples of 16 for bf16 packing):
      rows [0, SDp)         : w1 (rows >= state_dim are zero padding)
      rows [SDp, SDp+H)     : [w2 | w3] concatenated along lanes
      rows [SDp+H, SDp+H+8) : 0=b1 1=g1 2=be1 3=b2 4=g2 5=be2 6=b3
    Lane dim padded to 128 so the single parameter DMA is lane-dense.
    Done outside the hot path; every forward call issues only 2 input DMAs.
    """
    H, AD = hidden_dim, action_dim
    assert H + AD <= 128 and max(H, AD) <= 128
    SDp = _round_up(state_dim, 16)
    rows = SDp + H + 8
    slab = jnp.zeros((rows, 128), jnp.float32)
    slab = slab.at[:state_dim, :H].set(params["w1"])
    slab = slab.at[SDp:SDp + H, :H].set(params["w2"])
    slab = slab.at[SDp:SDp + H, H:H + AD].set(params["w3"])
    voff = SDp + H
    slab = slab.at[voff + 0, :H].set(params["b1"])
    slab = slab.at[voff + 1, :H].set(params["g1"])
    slab = slab.at[voff + 2, :H].set(params["be1"])
    slab = slab.at[voff + 3, :H].set(params["b2"])
    slab = slab.at[voff + 4, :H].set(params["g2"])
    slab = slab.at[voff + 5, :H].set(params["be2"])
    slab = slab.at[voff + 6, :AD].set(params["b3"])
    return slab.astype(jnp.bfloat16)


def actor_forward(state, params_slab, *, state_dim, hidden_dim, action_dim,
                  M, N, K, power_t, max_action=1.0):
    B = state.shape[0]
    assert state.shape[1] == state_dim

    kernel = functools.partial(
        _actor_kernel, state_dim=state_dim, hidden_dim=hidden_dim,
        action_dim=action_dim, M=M, N=N, K=K,
        power_t=float(power_t), max_action=float(max_action), eps=1e-5)

    vmem = pl.BlockSpec(memory_space=pltpu.MemorySpace.VMEM)
    flops = 2 * B * (state_dim * hidden_dim
                     + hidden_dim * hidden_dim
                     + hidden_dim * action_dim)
    transcendentals = B * (2 * hidden_dim + action_dim) + 2 * hidden_dim + 3 * B
    bytes_accessed = (4 * state.size            # f32 state in
                      + 2 * params_slab.size    # bf16 packed params in
                      + 4 * B * action_dim)     # f32 actions out

    return pl.pallas_call(
        kernel,
        out_shape=jax.ShapeDtypeStruct((B, action_dim), jnp.float32),
        in_specs=[vmem, vmem],
        out_specs=vmem,
        cost_estimate=pl.CostEstimate(
            flops=flops,
            transcendentals=transcendentals,
            bytes_accessed=bytes_accessed),
    )(state, params_slab)


if __name__ == "__main__":
    # Problem sizes (K == M so a[:, :M**2] reshapes to (M, K) in the reference,
    # and action_dim == 2*M**2 + 2*N + 2*K so the division_term lines up).
    M, K, N = 2, 2, 4
    power_t = 1.0
    state_dim = 28
    hidden_dim = 1 if state_dim == 0 else 2 ** (state_dim - 1).bit_length()  # 32
    action_dim = 2 * M * M + 2 * N + 2 * K                                   # 20
    batch = 8   # keep a multiple of 8 (f32 sublane); use B >= 128 in production

    key = jax.random.PRNGKey(0)
    k_state, k_params = jax.random.split(key)
    state = jax.random.normal(k_state, (batch, state_dim), dtype=jnp.float32)
    params = init_actor_params(k_params, state_dim, hidden_dim, action_dim)
    params_slab = pack_actor_params(params, state_dim, hidden_dim, action_dim)

    out = actor_forward(state, params_slab, state_dim=state_dim,
                        hidden_dim=hidden_dim, action_dim=action_dim,
                        M=M, N=N, K=K, power_t=power_t, max_action=1.0)
    out = jax.block_until_ready(out)

    assert out.shape == (batch, action_dim)
    assert bool(jnp.all(jnp.isfinite(out)))
    print("KERNEL_OK")
</pallas_src>

<mosaic_0001>
module attributes {stable_mosaic.version = 11 : i64} {
  func.func @_actor_kernel(%arg0: memref<8x28xf32, #tpu.memory_space<vmem>>, %arg1: memref<72x128xbf16, #tpu.memory_space<vmem>>, %arg2: memref<8x20xf32, #tpu.memory_space<vmem>>) attributes {dimension_semantics = [], scalar_prefetch = 0 : i64, scratch_operands = 0 : i64, tpu.core_type = #tpu.core_type<tc>} {
    %c0 = arith.constant 0 : index
    %c0_0 = arith.constant 0 : index
    %0 = vector.load %arg1[%c0, %c0_0] : memref<72x128xbf16, #tpu.memory_space<vmem>>, vector<28x32xbf16>
    %c32 = arith.constant 32 : index
    %c0_1 = arith.constant 0 : index
    %1 = vector.load %arg1[%c32, %c0_1] : memref<72x128xbf16, #tpu.memory_space<vmem>>, vector<32x32xbf16>
    %c32_2 = arith.constant 32 : index
    %c32_3 = arith.constant 32 : index
    %2 = vector.load %arg1[%c32_2, %c32_3] : memref<72x128xbf16, #tpu.memory_space<vmem>>, vector<32x20xbf16>
    %c64 = arith.constant 64 : index
    %c0_4 = arith.constant 0 : index
    %3 = vector.load %arg1[%c64, %c0_4] : memref<72x128xbf16, #tpu.memory_space<vmem>>, vector<8x32xbf16>
    %4 = arith.extf %3 : vector<8x32xbf16> to vector<8x32xf32>
    %5 = vector.extract_strided_slice %4 {offsets = [0, 0], sizes = [1, 32], strides = [1, 1]} : vector<8x32xf32> to vector<1x32xf32>
    %6 = vector.extract_strided_slice %4 {offsets = [1, 0], sizes = [1, 32], strides = [1, 1]} : vector<8x32xf32> to vector<1x32xf32>
    %7 = vector.extract_strided_slice %4 {offsets = [2, 0], sizes = [1, 32], strides = [1, 1]} : vector<8x32xf32> to vector<1x32xf32>
    %8 = vector.extract_strided_slice %4 {offsets = [3, 0], sizes = [1, 32], strides = [1, 1]} : vector<8x32xf32> to vector<1x32xf32>
    %9 = vector.extract_strided_slice %4 {offsets = [4, 0], sizes = [1, 32], strides = [1, 1]} : vector<8x32xf32> to vector<1x32xf32>
    %10 = vector.extract_strided_slice %4 {offsets = [5, 0], sizes = [1, 32], strides = [1, 1]} : vector<8x32xf32> to vector<1x32xf32>
    %11 = vector.extract_strided_slice %4 {offsets = [6, 0], sizes = [1, 20], strides = [1, 1]} : vector<8x32xf32> to vector<1x20xf32>
    %c0_5 = arith.constant 0 : index
    %c0_6 = arith.constant 0 : index
    %12 = vector.load %arg0[%c0_5, %c0_6] : memref<8x28xf32, #tpu.memory_space<vmem>>, vector<8x28xf32>
    %13 = arith.truncf %12 : vector<8x28xf32> to vector<8x28xbf16>
    %cst = arith.constant dense<0.000000e+00> : vector<8x32xf32>
    %14 = tpu.matmul %13, %0, %cst {dimension_numbers = #tpu.dot_dimension_numbers<[1], [0], [0], [1], [0, 0, 1, 1], [], []>} : vector<8x28xbf16>, vector<28x32xbf16>, vector<8x32xf32> -> vector<8x32xf32>
    %15 = vector.broadcast %5 : vector<1x32xf32> to vector<8x32xf32>
    %16 = arith.addf %14, %15 : vector<8x32xf32>
    %17 = math.tanh %16 : vector<8x32xf32>
    %cst_7 = arith.constant dense<0.000000e+00> : vector<32xf32>
    %18 = vector.multi_reduction <add>, %17, %cst_7 [0] : vector<8x32xf32> to vector<32xf32>
    %19 = vector.shape_cast %18 : vector<32xf32> to vector<1x32xf32>
    %cst_8 = arith.constant 8.000000e+00 : f32
    %20 = vector.broadcast %cst_8 : f32 to vector<1x32xf32>
    %21 = arith.divf %19, %20 : vector<1x32xf32>
    %22 = arith.mulf %17, %17 : vector<8x32xf32>
    %cst_9 = arith.constant dense<0.000000e+00> : vector<32xf32>
    %23 = vector.multi_reduction <add>, %22, %cst_9 [0] : vector<8x32xf32> to vector<32xf32>
    %24 = vector.shape_cast %23 : vector<32xf32> to vector<1x32xf32>
    %cst_10 = arith.constant 8.000000e+00 : f32
    %25 = vector.broadcast %cst_10 : f32 to vector<1x32xf32>
    %26 = arith.divf %24, %25 : vector<1x32xf32>
    %27 = arith.mulf %21, %21 : vector<1x32xf32>
    %28 = arith.subf %26, %27 : vector<1x32xf32>
    %cst_11 = arith.constant 9.99999974E-6 : f32
    %29 = vector.broadcast %cst_11 : f32 to vector<1x32xf32>
    %30 = arith.addf %28, %29 : vector<1x32xf32>
    %31 = math.rsqrt %30 : vector<1x32xf32>
    %32 = arith.mulf %6, %31 : vector<1x32xf32>
    %33 = arith.mulf %21, %32 : vector<1x32xf32>
    %34 = arith.subf %7, %33 : vector<1x32xf32>
    %35 = vector.broadcast %32 : vector<1x32xf32> to vector<8x32xf32>
    %36 = arith.mulf %17, %35 : vector<8x32xf32>
    %37 = vector.broadcast %34 : vector<1x32xf32> to vector<8x32xf32>
    %38 = arith.addf %36, %37 : vector<8x32xf32>
    %39 = arith.truncf %38 : vector<8x32xf32> to vector<8x32xbf16>
    %cst_12 = arith.constant dense<0.000000e+00> : vector<8x32xf32>
    %40 = tpu.matmul %39, %1, %cst_12 {dimension_numbers = #tpu.dot_dimension_numbers<[1], [0], [0], [1], [0, 0, 1, 1], [], []>} : vector<8x32xbf16>, vector<32x32xbf16>, vector<8x32xf32> -> vector<8x32xf32>
    %41 = vector.broadcast %8 : vector<1x32xf32> to vector<8x32xf32>
    %42 = arith.addf %40, %41 : vector<8x32xf32>
    %43 = math.tanh %42 : vector<8x32xf32>
    %cst_13 = arith.constant dense<0.000000e+00> : vector<32xf32>
    %44 = vector.multi_reduction <add>, %43, %cst_13 [0] : vector<8x32xf32> to vector<32xf32>
    %45 = vector.shape_cast %44 : vector<32xf32> to vector<1x32xf32>
    %cst_14 = arith.constant 8.000000e+00 : f32
    %46 = vector.broadcast %cst_14 : f32 to vector<1x32xf32>
    %47 = arith.divf %45, %46 : vector<1x32xf32>
    %48 = arith.mulf %43, %43 : vector<8x32xf32>
    %cst_15 = arith.constant dense<0.000000e+00> : vector<32xf32>
    %49 = vector.multi_reduction <add>, %48, %cst_15 [0] : vector<8x32xf32> to vector<32xf32>
    %50 = vector.shape_cast %49 : vector<32xf32> to vector<1x32xf32>
    %cst_16 = arith.constant 8.000000e+00 : f32
    %51 = vector.broadcast %cst_16 : f32 to vector<1x32xf32>
    %52 = arith.divf %50, %51 : vector<1x32xf32>
    %53 = arith.mulf %47, %47 : vector<1x32xf32>
    %54 = arith.subf %52, %53 : vector<1x32xf32>
    %cst_17 = arith.constant 9.99999974E-6 : f32
    %55 = vector.broadcast %cst_17 : f32 to vector<1x32xf32>
    %56 = arith.addf %54, %55 : vector<1x32xf32>
    %57 = math.rsqrt %56 : vector<1x32xf32>
    %58 = arith.mulf %9, %57 : vector<1x32xf32>
    %59 = arith.mulf %47, %58 : vector<1x32xf32>
    %60 = arith.subf %10, %59 : vector<1x32xf32>
    %61 = vector.broadcast %58 : vector<1x32xf32> to vector<8x32xf32>
    %62 = arith.mulf %43, %61 : vector<8x32xf32>
    %63 = vector.broadcast %60 : vector<1x32xf32> to vector<8x32xf32>
    %64 = arith.addf %62, %63 : vector<8x32xf32>
    %65 = arith.truncf %64 : vector<8x32xf32> to vector<8x32xbf16>
    %cst_18 = arith.constant dense<0.000000e+00> : vector<8x20xf32>
    %66 = tpu.matmul %65, %2, %cst_18 {dimension_numbers = #tpu.dot_dimension_numbers<[1], [0], [0], [1], [0, 0, 1, 1], [], []>} : vector<8x32xbf16>, vector<32x20xbf16>, vector<8x20xf32> -> vector<8x20xf32>
    %67 = vector.broadcast %11 : vector<1x20xf32> to vector<8x20xf32>
    %68 = arith.addf %66, %67 : vector<8x20xf32>
    %69 = math.tanh %68 : vector<8x20xf32>
    %70 = vector.extract_strided_slice %69 {offsets = [0, 0], sizes = [8, 8], strides = [1, 1]} : vector<8x20xf32> to vector<8x8xf32>
    %71 = arith.mulf %70, %70 : vector<8x8xf32>
    %cst_19 = arith.constant dense<0.000000e+00> : vector<8xf32>
    %72 = vector.multi_reduction <add>, %71, %cst_19 [1] : vector<8x8xf32> to vector<8xf32>
    %73 = vector.shape_cast %72 : vector<8xf32> to vector<8x1xf32>
    %74 = math.rsqrt %73 : vector<8x1xf32>
    %cst_20 = arith.constant 1.000000e+00 : f32
    %75 = vector.broadcast %cst_20 : f32 to vector<8x1xf32>
    %76 = arith.mulf %74, %75 : vector<8x1xf32>
    %77 = math.absf %69 : vector<8x20xf32>
    %78 = vector.extract_strided_slice %77 {offsets = [0, 12], sizes = [8, 4], strides = [1, 1]} : vector<8x20xf32> to vector<8x4xf32>
    %cst_21 = arith.constant dense<0.000000e+00> : vector<8xf32>
    %79 = vector.multi_reduction <add>, %78, %cst_21 [1] : vector<8x4xf32> to vector<8xf32>
    %80 = vector.shape_cast %79 : vector<8xf32> to vector<8x1xf32>
    %81 = vector.extract_strided_slice %77 {offsets = [0, 16], sizes = [8, 4], strides = [1, 1]} : vector<8x20xf32> to vector<8x4xf32>
    %cst_22 = arith.constant dense<0.000000e+00> : vector<8xf32>
    %82 = vector.multi_reduction <add>, %81, %cst_22 [1] : vector<8x4xf32> to vector<8xf32>
    %83 = vector.shape_cast %82 : vector<8xf32> to vector<8x1xf32>
    %84 = tpu.reciprocal %80 {approx = true} : vector<8x1xf32> -> vector<8x1xf32>
    %cst_23 = arith.constant 0.707106769 : f32
    %85 = vector.broadcast %cst_23 : f32 to vector<8x1xf32>
    %86 = arith.mulf %84, %85 : vector<8x1xf32>
    %87 = tpu.reciprocal %83 {approx = true} : vector<8x1xf32> -> vector<8x1xf32>
    %cst_24 = arith.constant 0.707106769 : f32
    %88 = vector.broadcast %cst_24 : f32 to vector<8x1xf32>
    %89 = arith.mulf %87, %88 : vector<8x1xf32>
    %90 = tpu.iota {dimensions = array<i32: 1>} : vector<8x20xi32>
    %c8_i32 = arith.constant 8 : i32
    %91 = vector.broadcast %c8_i32 : i32 to vector<8x20xi32>
    %92 = arith.cmpi slt, %90, %91 : vector<8x20xi32>
    %c12_i32 = arith.constant 12 : i32
    %93 = vector.broadcast %c12_i32 : i32 to vector<8x20xi32>
    %94 = arith.cmpi slt, %90, %93 : vector<8x20xi32>
    %c16_i32 = arith.constant 16 : i32
    %95 = vector.broadcast %c16_i32 : i32 to vector<8x20xi32>
    %96 = arith.cmpi slt, %90, %95 : vector<8x20xi32>
    %cst_25 = arith.constant 1.000000e+00 : f32
    %97 = vector.shape_cast %89 : vector<8x1xf32> to vector<8x1xf32>
    %98 = vector.broadcast %97 : vector<8x1xf32> to vector<8x20xf32>
    %99 = vector.broadcast %cst_25 : f32 to vector<8x20xf32>
    %100 = arith.select %96, %98, %99 : vector<8x20xi1>, vector<8x20xf32>
    %101 = vector.shape_cast %86 : vector<8x1xf32> to vector<8x1xf32>
    %102 = vector.broadcast %101 : vector<8x1xf32> to vector<8x20xf32>
    %103 = arith.select %94, %102, %100 : vector<8x20xi1>, vector<8x20xf32>
    %104 = vector.shape_cast %76 : vector<8x1xf32> to vector<8x1xf32>
    %105 = vector.broadcast %104 : vector<8x1xf32> to vector<8x20xf32>
    %106 = arith.select %92, %105, %103 : vector<8x20xi1>, vector<8x20xf32>
    %107 = arith.mulf %69, %106 : vector<8x20xf32>
    %c0_26 = arith.constant 0 : index
    %c0_27 = arith.constant 0 : index
    %108 = vector.load %arg2[%c0_26, %c0_27] : memref<8x20xf32, #tpu.memory_space<vmem>>, vector<8x20xf32>
    tpu.vector_store %arg2[%c0_26, %c0_27], %107 {strides = array<i32>} : memref<8x20xf32, #tpu.memory_space<vmem>>, vector<8x20xf32>,
    return
  }
}

</mosaic_0001>

<bundles_post_ra>
// kernel: tpu_custom_call.1
= control target key start
LH: loop header
LB: loop body
LE: loop exit
PB: predicated region body
PF: predicated region fallthrough
CT: control target
= control target key end

     0   :  { %7 = vsyncpa [#allocation3], 0  ;;  %s567_s0 = inlined_call_operand.hbm [shape: f32[8,28], index: 0, kind: input, shape index: {}]   ;;  %s568_s1 = inlined_call_operand.hbm [shape: bf16[72,128], index: 1, kind: input, shape index: {}]   ;;  %s569_s2 = inlined_call_operand.hbm [shape: f32[8,20], index: 2, kind: output, shape index: {}]  }
   0x1   :  { %8 = vsyncpa [#allocation6], 0 }
   0x2   :  { %9 = vsyncpa [#allocation4], 0  ;;  %s495_s9 = smov [#allocation2]   ;;  %s496_s11 = smov [#allocation5]  }
   0x3   :  { %s16_s10 = sshll.u32 %s495_s9, 4  ;;  %s25_s12 = sshll.u32 %s496_s11, 4  ;;  %s17_s10 = int_to_ptr.vmem [resolvable:$true] %s16_s10  ;;  %s26_s12 = int_to_ptr.vmem [resolvable:$true] %s25_s12 }
   0x4   :  { %s437_s13 = scalar_lea.vmem %s17_s10, 128  ;;  %p442_p1 = scmp.lt.s32.totalorder %s17_s10, %s17_s10 }
   0x5   :  { %p438_p0 = scmp.ne.s32.totalorder %s17_s10, %s437_s13  ;;  %p443_p2 = scmp.lt.s32.totalorder %s437_s13, %s437_s13 }
   0x7   :  { %p444_p3 = por %p443_p2, %p442_p1 }
   0x9   :  { %p445_p4 = pnand %p444_p3, %p438_p0 }
   0xb   :  { %448 = shalt.err (!%p445_p4)
}
   0xc   :  { %19 = dma.hbm_to_vmem [thread:$0]  %s567_s0, 128, %s17_s10, [#allocation3]  }
   0xd   :  { %s457_s16 = scalar_lea.vmem %s26_s12, 576  ;;  %p462_p6 = scmp.lt.s32.totalorder %s26_s12, %s26_s12 }
   0xe   :  { %p458_p5 = scmp.ne.s32.totalorder %s26_s12, %s457_s16  ;;  %p463_p7 = scmp.lt.s32.totalorder %s457_s16, %s457_s16 }
  0x10   :  { %p464_p8 = por %p463_p7, %p462_p6 }
  0x12   :  { %p465_p9 = pnand %p464_p8, %p458_p5 }
  0x14   :  { %468 = shalt.err (!%p465_p9)
}
  0x15   :  { %s497_s17 = smov 64   ;;  %s498_s18 = smov 4  }
  0x16   :  { %31 = dma.hbm_to_vmem [thread:$0]  %s568_s1, 576, %s26_s12, [#allocation6], %s497_s17, %s497_s17, %s498_s18  }
  0x17   :  { %489 = dma.done.wait [#allocation3], 128  }
  0x18   :  { %490 = vsyncadd [#allocation3], 4294967168 }
  0x19   :  { %491 = dma.done.wait [#allocation6], 576  }
  0x1a   :  { %492 = vsyncadd [#allocation6], 4294966720  ;;  %v499_v0 = vmov 0.0   ;;  %vm500_vm0 = vmmov 0   ;;  %vm70_vm1 = vcmask 1045504   ;;  %v410_v3 = vld [vmem:[#allocation5] sm:$0xff]   ;;  %v51_v8 = vlaneseq }
  0x1b   :  { %375 = vmatprep.subr.bf16.mxu0 %v499_v0  ;;  %379 = vmatprep.mubr.msk.bf16.mxu0 %vm500_vm0, %v499_v0  ;;  %v409_v1 = vld [vmem:[#allocation5 + $0x8] sm:$0x3f]   ;;  %v49_v4 = vld [vmem:[#allocation2] sm:$0xff]  ;;  %vm66_vm2 = vcmask 228352   ;;  %v412_v7 = vld [vmem:[#allocation5 + $0x10] sm:$0xff]   ;;  %s501_s0 = smov 96  }
  0x1c   :  { %383 = vmatprep.subr.bf16.mxu1 %v499_v0  ;;  %387 = vmatprep.mubr.msk.bf16.mxu1 %vm500_vm0, %v499_v0  ;;  %v72_v2 = vsel %vm70_vm1, %v409_v1, 0  ;;  %v50_v5 = vpack.c.bf16 %v49_v4, %v49_v4  ;;  %v411_v6 = vld [vmem:[#allocation5 + $0x18] sm:$0xff]   ;;  %v538_v9 = vshrl.u32 %v51_v8, 7  ;;  %v47_v10 = vld [vmem:[#allocation5 + $0x20] sm:$0xf]  ;;  %vm115_vm3 = vcmask 261120  }
  0x1d   :  { %376 = vmatpush3.bf16.msra.mxu0 %v72_v2  ;;  %384 = vmatpush3.bf16.msra.mxu1 %v411_v6  ;;  %v540_v11 = vunpack.c.l.bf16 %v47_v10  ;;  %s502_s1 = smov 112   ;;  %s503_s21 = smov 116   ;;  %vm318_vm4 = vcmask 31744   ;;  %vm308_vm5 = vcmask 64512   ;;  %vm341_vm9 = vcmask 162816  }
  0x1e   :  { %377 = vmatprep.subr.bf16.mxu0 %v499_v0  ;;  %385 = vmatprep.subr.bf16.mxu1 %v499_v0  ;;  %v53_v12 = vsub.s32 0, %v538_v9  ;;  %v146_v42 = vsub.s32 1, %v538_v9  ;;  %v151_v46 = vsub.s32 2, %v538_v9  ;;  %v157_v54 = vsub.s32 3, %v538_v9  ;;  %s504_s22 = smov [#allocation7]  }
  0x1f   :  { %259 = vrot.lane.b32.xlu0 %v411_v6, %s501_s0  ;;  %s349_s23 = sshll.u32 %s504_s22, 4  ;;  %s350_s23 = int_to_ptr.vmem [resolvable:$true] %s349_s23 }
  0x20   :  { %v54_v13 = vrot.slane %v540_v11, %v53_v12  ;;  %v158_v55 = vrot.slane %v540_v11, %v157_v54  ;;  %s469_s24 = scalar_lea.vmem %s350_s23, 128  ;;  %p474_p11 = scmp.lt.s32.totalorder %s350_s23, %s350_s23 }
  0x21   :  { %378 = vmatpush3.bf16.msra.mxu0 %v410_v3  ;;  %386 = vmatpush3.bf16.msra.mxu1 %v412_v7  ;;  %p470_p10 = scmp.ne.s32.totalorder %s350_s23, %s469_s24  ;;  %p475_p12 = scmp.lt.s32.totalorder %s469_s24, %s469_s24 }
  0x22   :  { %391 = vmatprep.subr.bf16.mxu0 %v499_v0 }
  0x23   :  { %257 = vrot.lane.b32.xlu0 %v412_v7, %s501_s0  ;;  %p476_p13 = por %p475_p12, %p474_p11 }
  0x24   :  { %380 = vmatmul.mubr.msk.bf16.vlgmr.msra.gmra.mxu0 %vm66_vm2, %v50_v5 }
  0x25   :  { %395 = vmatprep.mubr.msk.bf16.mxu0 %vm500_vm0, %v499_v0  ;;  %p477_p0 = pnand %p476_p13, %p470_p10 }
  0x91   :  { %v260_v52 = vpop.permute.xlu0 %259 }
  0x92   :  { %392 = vmatpush3.bf16.msra.mxu0 %v260_v52 }
  0x93   :  { %393 = vmatprep.subr.bf16.mxu0 %v499_v0 }
  0x95   :  { %v258_v53 = vpop.permute.xlu0 %257 }
  0x96   :  { %394 = vmatpush3.bf16.msra.mxu0 %v258_v53 }
  0xe4   :  { %v108_v14 = vpop.f32.mrf.mxu0 }
  0xe5   :  { %v109_v15 = vadd.f32 %v108_v14, %v54_v13 }
  0xe6   :  { %v381_v16 = vpop.f32.mrf.mxu0 }
  0xe7   :  { %413 = vtanh.f32 %v109_v15 }
  0xe8   :  { %v111_v17 = vpop.f32.mrf.mxu0 }
  0xea   :  { %v382_v18 = vpop.f32.mrf.mxu0 }
  0xf4   :  { %v414_v19 = vpop.eup %413 }
  0xf5   :  { %v116_v20 = vsel %vm115_vm3, %v414_v19, 0.0  ;;  %v125_v21 = vmul.f32 %v414_v19, %v414_v19 }
  0xf6   :  { %v117_v22 = vrot.slane %v116_v20, 4 }
  0xf7   :  { %v126_v23 = vsel %vm115_vm3, %v125_v21, 0.0 }
  0xf8   :  { %v118_v24 = vadd.f32 %v117_v22, %v116_v20  ;;  %v127_v25 = vrot.slane %v126_v23, 4 }
  0xfa   :  { %v119_v26 = vrot.slane %v118_v24, 2  ;;  %v128_v27 = vadd.f32 %v127_v25, %v126_v23  ;;  %v244_v23 = vsub.s32 4, %v538_v9 }
  0xfc   :  { %v120_v28 = vadd.f32 %v119_v26, %v118_v24  ;;  %v129_v29 = vrot.slane %v128_v27, 2 }
  0xfe   :  { %v121_v30 = vrot.slane %v120_v28, 1  ;;  %v130_v31 = vadd.f32 %v129_v29, %v128_v27  ;;  %v249_v27 = vsub.s32 5, %v538_v9 }
 0x100   :  { %v122_v32 = vadd.f32 %v121_v30, %v120_v28  ;;  %v131_v33 = vrot.slane %v130_v31, 1 }
 0x102   :  { %v124_v34 = vmul.f32 0.125, %v122_v32  ;;  %v132_v35 = vadd.f32 %v131_v33, %v130_v31  ;;  %v255_v33 = vsub.s32 6, %v538_v9 }
 0x104   :  { %v133_v36 = vmul.f32 0.125, %v132_v35  ;;  %v134_v37 = vmul.f32 %v124_v34, %v124_v34 }
 0x106   :  { %v135_v38 = vsub.f32 %v133_v36, %v134_v37 }
 0x108   :  { %v136_v39 = vadd.f32 1e-05, %v135_v38 }
 0x10a   :  { %415 = vrsqrt.f32 %v136_v39 }
 0x117   :  { %v416_v40 = vpop.eup %415 }
 0x118   :  { %v138_v41 = vmul.f32 %v416_v40, %v540_v11 }
 0x11a   :  { %v139_v43 = vmul.f32 %v138_v41, %v124_v34  ;;  %v147_v45 = vrot.slane %v138_v41, %v146_v42  ;;  %v256_v34 = vrot.slane %v540_v11, %v255_v33 }
 0x11c   :  { %v141_v44 = vrot.slane %v139_v43, 7  ;;  %v148_v48 = vmul.f32 %v414_v19, %v147_v45 }
 0x11e   :  { %v143_v47 = vsub.f32 %v540_v11, %v141_v44 }
 0x120   :  { %v152_v49 = vrot.slane %v143_v47, %v151_v46 }
 0x122   :  { %v153_v50 = vadd.f32 %v152_v49, %v148_v48  ;;  %v333_v49 = vand.u32 127, %v51_v8 }
 0x124   :  { %v154_v51 = vpack.c.bf16 %v153_v50, %v153_v50  ;;  %vm336_vm6 = vcmp.lt.s32.totalorder %v333_v49, 16  ;;  %vm335_vm7 = vcmp.lt.s32.totalorder %v333_v49, 12  ;;  %vm334_vm8 = vcmp.lt.s32.totalorder %v333_v49, 8 }
 0x126   :  { %388 = vmatmul.mubr.msk.bf16.vlgmr.msra.gmra.mxu1 %vm115_vm3, %v154_v51 }
 0x1e6   :  { %v208_v56 = vpop.f32.mrf.mxu1 }
 0x1e7   :  { %v209_v57 = vadd.f32 %v208_v56, %v158_v55 }
 0x1e8   :  { %v389_v58 = vpop.f32.mrf.mxu1 }
 0x1e9   :  { %417 = vtanh.f32 %v209_v57 }
 0x1ea   :  { %v211_v59 = vpop.f32.mrf.mxu1 }
 0x1ec   :  { %v390_v60 = vpop.f32.mrf.mxu1 }
 0x1f6   :  { %v418_v61 = vpop.eup %417 }
 0x1f7   :  { %v223_v62 = vmul.f32 %v418_v61, %v418_v61  ;;  %v215_v63 = vsel %vm115_vm3, %v418_v61, 0.0 }
 0x1f8   :  { %v216_v1 = vrot.slane %v215_v63, 4 }
 0x1f9   :  { %v224_v2 = vsel %vm115_vm3, %v223_v62, 0.0 }
 0x1fa   :  { %v217_v0 = vadd.f32 %v216_v1, %v215_v63  ;;  %v225_v3 = vrot.slane %v224_v2, 4 }
 0x1fc   :  { %v218_v4 = vrot.slane %v217_v0, 2  ;;  %v226_v5 = vadd.f32 %v225_v3, %v224_v2 }
 0x1fe   :  { %v219_v6 = vadd.f32 %v218_v4, %v217_v0  ;;  %v227_v7 = vrot.slane %v226_v5, 2 }
 0x200   :  { %v220_v10 = vrot.slane %v219_v6, 1  ;;  %v228_v12 = vadd.f32 %v227_v7, %v226_v5 }
 0x202   :  { %v221_v13 = vadd.f32 %v220_v10, %v219_v6  ;;  %v229_v14 = vrot.slane %v228_v12, 1 }
 0x204   :  { %v222_v15 = vmul.f32 0.125, %v221_v13  ;;  %v230_v16 = vadd.f32 %v229_v14, %v228_v12 }
 0x206   :  { %v231_v17 = vmul.f32 0.125, %v230_v16  ;;  %v232_v18 = vmul.f32 %v222_v15, %v222_v15 }
 0x208   :  { %v233_v19 = vsub.f32 %v231_v17, %v232_v18 }
 0x20a   :  { %v234_v20 = vadd.f32 1e-05, %v233_v19 }
 0x20c   :  { %419 = vrsqrt.f32 %v234_v20 }
 0x219   :  { %v420_v21 = vpop.eup %419 }
 0x21a   :  { %v236_v22 = vmul.f32 %v420_v21, %v540_v11 }
 0x21c   :  { %v237_v24 = vmul.f32 %v236_v22, %v222_v15  ;;  %v245_v26 = vrot.slane %v236_v22, %v244_v23 }
 0x21e   :  { %v239_v25 = vrot.slane %v237_v24, 7  ;;  %v246_v29 = vmul.f32 %v418_v61, %v245_v26 }
 0x220   :  { %v241_v28 = vsub.f32 %v540_v11, %v239_v25 }
 0x222   :  { %v250_v30 = vrot.slane %v241_v28, %v249_v27 }
 0x224   :  { %v251_v31 = vadd.f32 %v250_v30, %v246_v29 }
 0x226   :  { %v252_v32 = vpack.c.bf16 %v251_v31, %v251_v31 }
 0x228   :  { %396 = vmatmul.mubr.msk.bf16.vlgmr.msra.gmra.mxu0 %vm115_vm3, %v252_v32 }
 0x2e8   :  { %v300_v35 = vpop.f32.mrf.mxu0 }
 0x2e9   :  { %v301_v36 = vadd.f32 %v300_v35, %v256_v34 }
 0x2ea   :  { %v397_v37 = vpop.f32.mrf.mxu0 }
 0x2eb   :  { %421 = vtanh.f32 %v301_v36 }
 0x2ec   :  { %v303_v38 = vpop.f32.mrf.mxu0 }
 0x2ee   :  { %v398_v39 = vpop.f32.mrf.mxu0 }
 0x2f8   :  { %v422_v40 = vpop.eup %421 }
 0x2f9   :  { %v313_v41 = vand.u32 2147483647, %v422_v40  ;;  %v307_v44 = vmul.f32 %v422_v40, %v422_v40 }
 0x2fb   :  { %322 = vrot.lane.b32.xlu1 %v313_v41, %s502_s1  ;;  %v309_v45 = vsel %vm308_vm5, %v307_v44, 0.0 }
 0x2ff   :  { %315 = vrot.lane.b32.xlu1 %v313_v41, %s503_s21 }
 0x36d   :  { %v323_v42 = vpop.permute.xlu1 %322 }
 0x36e   :  { %v325_v43 = vsel %vm318_vm4, %v323_v42, 0.0 }
 0x36f   :  { %326 = vadd.xlane.f32.xlu0 %v325_v43 }
 0x371   :  { %v316_v9 = vpop.permute.xlu1 %315 }
 0x372   :  { %v319_v11 = vsel %vm318_vm4, %v316_v9, 0.0 }
 0x373   :  { %320 = vadd.xlane.f32.xlu1 %v319_v11  ;;  %310 = vadd.xlane.f32.xlu0 %v309_v45 }
 0x3f8   :  { %v327_v46 = vpop.xlane.xlu0 %326 }
 0x3f9   :  { %423 = vrcp.f32 %v327_v46 }
 0x3fc   :  { %v321_v47 = vpop.xlane.xlu1 %320  ;;  %v311_v48 = vpop.xlane.xlu0 %310 }
 0x3fd   :  { %425 = vrcp.f32 %v321_v47 }
 0x3fe   :  { %427 = vrsqrt.f32 %v311_v48 }
 0x406   :  { %v424_v50 = vpop.eup %423 }
 0x407   :  { %v331_v51 = vmul.f32 0.70710677, %v424_v50 }
 0x409   :  { %v337_v54 = vsel %vm336_vm6, %v331_v51, 1.0 }
 0x40a   :  { %v426_v52 = vpop.eup %425 }
 0x40b   :  { %v329_v53 = vmul.f32 0.70710677, %v426_v52  ;;  %v428_v55 = vpop.eup %427 }
 0x40d   :  { %v338_v56 = vsel %vm335_vm7, %v329_v53, %v337_v54 }
 0x40e   :  { %v339_v57 = vsel %vm334_vm8, %v428_v55, %v338_v56 }
 0x40f   :  { %v340_v58 = vmul.f32 %v422_v40, %v339_v57 }
 0x411   :  { %342 = vst.msk [vmem:[#allocation7] sm:$0xff] %vm341_vm9, %v340_v58 }
 0x412   :  { %480 = shalt.err (!%p477_p0)
}
 0x413   :  { %352 = dma.vmem_to_hbm [thread:$0]  %s350_s23, 128, %s569_s2, [#allocation4]  }
 0x414   :  { %493 = dma.done.wait [#allocation4], 128  }
 0x415   :  { %494 = vsyncadd [#allocation4], 4294967168 }
 0x416   :  { %356 = vsyncpa [#allocation3], 1 }
 0x417   :  { %357 = vsyncpa [#allocation6], 1 }
 0x418   :  { %358 = vsyncpa [#allocation4], 1 }

</bundles_post_ra>
